<compile_context>
chip_gen: v7x
topology: tpu7x:2x2x1
jax: 0.10.0
libtpu: 0.0.40
codegen_flags: <defaults>
</compile_context>

<pallas_src>
import jax
import jax.numpy as jnp
from jax.experimental import pallas as pl
from jax.experimental.pallas import tpu as pltpu

LANE = 128
SUB_BF16 = 16   # bf16 sublane packing (16 rows per vreg)


def _round_up(n, m):
    return ((n + m - 1) // m) * m


# ---------------------------------------------------------------------------
# Pallas kernel: full decoder MLP for one batch tile.
# ---------------------------------------------------------------------------
def _decoder_kernel(
    x_ref,                       # (tb, d_in_p)   bf16
    w1_ref, b1_ref,              # Linear1 (BN folded)   w: bf16, b: f32 (1, h3_p)
    w2_ref, b2_ref,              # Linear2 (BN folded)
    w3_ref, b3_ref,              # Linear3 (BN folded)
    w4_ref, b4_ref,              # output head
    o_ref,                       # (tb, d_out_p)  bf16
):
    h = x_ref[...]                                                     # bf16

    # layer 1: Linear(+folded BN) -> (Dropout = id) -> ReLU
    h = jnp.dot(h, w1_ref[...], preferred_element_type=jnp.float32) + b1_ref[...]
    h = jnp.maximum(h, 0.0).astype(jnp.bfloat16)

    # layer 2
    h = jnp.dot(h, w2_ref[...], preferred_element_type=jnp.float32) + b2_ref[...]
    h = jnp.maximum(h, 0.0).astype(jnp.bfloat16)

    # layer 3
    h = jnp.dot(h, w3_ref[...], preferred_element_type=jnp.float32) + b3_ref[...]
    h = jnp.maximum(h, 0.0).astype(jnp.bfloat16)

    # output head: Linear -> Sigmoid (epilogue in f32, single cast on store)
    y = jnp.dot(h, w4_ref[...], preferred_element_type=jnp.float32) + b4_ref[...]
    o_ref[...] = jax.nn.sigmoid(y).astype(o_ref.dtype)


# ---------------------------------------------------------------------------
# One-time host prep: BN fold, padding, dtype casts.
# ---------------------------------------------------------------------------
def _pad2(a, rows, cols, dtype):
    a = jnp.asarray(a, jnp.float32)
    a = jnp.pad(a, ((0, rows - a.shape[0]), (0, cols - a.shape[1])))
    return a.astype(dtype)


def prepare_params(params):
    """Fold eval-mode BatchNorm into each Linear, pad to lane/sublane multiples,
    and cast weights to bf16.  Call ONCE; reuse the result for every forward."""
    d_in = params["w1"].shape[0]
    d_out = params["w4"].shape[1]
    d_in_p = _round_up(d_in, SUB_BF16)       # bf16 sublane packing for w1 rows

    ops = []
    prev_p = d_in_p
    for n in ("1", "2", "3"):
        wf = params["w" + n] * params["s" + n]                 # W' = W * s
        bf = params["b" + n] * params["s" + n] + params["t" + n]  # b' = b*s + t
        cols_p = _round_up(wf.shape[1], LANE)
        ops.append((_pad2(wf, prev_p, cols_p, jnp.bfloat16),
                    _pad2(bf, 1, cols_p, jnp.float32)))
        prev_p = cols_p
    d_out_p = _round_up(d_out, LANE)
    ops.append((_pad2(params["w4"], prev_p, d_out_p, jnp.bfloat16),
                _pad2(params["b4"], 1, d_out_p, jnp.float32)))

    return {"d_in": d_in, "d_in_p": d_in_p,
            "d_out": d_out, "d_out_p": d_out_p, "ops": ops}


# ---------------------------------------------------------------------------
# Wrapper: concat, batch tiling, pallas_call, slice.
# ---------------------------------------------------------------------------
def _choose_batch_tile(B):
    # Aim for >= 2 grid steps (v7x has 2 TensorCores; "parallel" shards them),
    # with a 2048-row cap so per-step tiles stay a few MiB at most.
    tb = _round_up(max(-(-B // 2), SUB_BF16), SUB_BF16)
    return min(tb, 2048)


def nn_decoder_forward(z, c, label, prepped, *, tb=None):
    """NNDecoder forward.  z:(B,E) c:(B,1) label:(B,L); prepped = prepare_params(params)."""
    x = jnp.concatenate([z, c, label], axis=1).astype(jnp.bfloat16)   # (B, d_in)
    B, d_in = x.shape
    d_in_p = prepped["d_in_p"]
    d_out, d_out_p = prepped["d_out"], prepped["d_out_p"]

    if tb is None:
        tb = _choose_batch_tile(B)
    B_pad = _round_up(B, tb)
    if (B_pad, d_in_p) != (B, d_in):
        x = jnp.pad(x, ((0, B_pad - B), (0, d_in_p - d_in)))

    def const_spec(shape):
        # Grid-invariant operands: same block every step, stays VMEM-resident.
        return pl.BlockSpec(shape, lambda i: (0, 0))

    in_specs = [pl.BlockSpec((tb, d_in_p), lambda i: (i, 0))]
    args = [x]
    for w, b in prepped["ops"]:
        in_specs += [const_spec(w.shape), const_spec(b.shape)]
        args += [w, b]

    out_p = pl.pallas_call(
        _decoder_kernel,
        out_shape=jax.ShapeDtypeStruct((B_pad, d_out_p), jnp.bfloat16),
        grid_spec=pltpu.PrefetchScalarGridSpec(
            num_scalar_prefetch=0,
            grid=(B_pad // tb,),
            in_specs=in_specs,
            out_specs=pl.BlockSpec((tb, d_out_p), lambda i: (i, 0)),
        ),
        compiler_params=pltpu.CompilerParams(
            dimension_semantics=("parallel",)),
    )(*args)

    # Padded rows / columns (sigmoid(0)=0.5) are garbage: the slice is mandatory.
    return out_p[:B, :d_out].astype(jnp.float32)


# ---------------------------------------------------------------------------
# Deterministic parameter construction (PyTorch-style Linear init; fresh BN).
# ---------------------------------------------------------------------------
def make_params(key, d_in, h3, h2, h1, d_out, bn_eps=1e-5):
    dims = [(d_in, h3), (h3, h2), (h2, h1), (h1, d_out)]
    params = {}
    keys = jax.random.split(key, 2 * len(dims))
    for idx, (fi, fo) in enumerate(dims):
        bound = 1.0 / jnp.sqrt(fi)
        w = jax.random.uniform(keys[2 * idx], (fi, fo), jnp.float32, -bound, bound)
        b = jax.random.uniform(keys[2 * idx + 1], (1, fo), jnp.float32, -bound, bound)
        n = str(idx + 1)
        params["w" + n] = w
        params["b" + n] = b
        if idx < 3:
            # Fresh BatchNorm1d in eval: gamma=1, beta=0, running_mean=0, var=1.
            # TODO(synk): training-mode BN (batch statistics) is not supported.
            gamma = jnp.ones((1, fo), jnp.float32)
            beta = jnp.zeros((1, fo), jnp.float32)
            mean = jnp.zeros((1, fo), jnp.float32)
            var = jnp.ones((1, fo), jnp.float32)
            scale = gamma / jnp.sqrt(var + bn_eps)
            shift = beta - mean * scale
            params["s" + n] = scale
            params["t" + n] = shift
    return params


# Pure-JAX references for correctness checks.
def reference_forward_f32(z, c, label, params):
    x = jnp.concatenate([z, c, label], axis=1).astype(jnp.float32)
    for n in ("1", "2", "3"):
        x = x @ params["w" + n] + params["b" + n]
        x = x * params["s" + n] + params["t" + n]
        x = jnp.maximum(x, 0.0)
    x = x @ params["w4"] + params["b4"]
    return jax.nn.sigmoid(x)


def reference_forward_bf16(z, c, label, params):
    # Mirrors the kernel math: BN folded, bf16 operands, f32 accum, bf16 output.
    x = jnp.concatenate([z, c, label], axis=1).astype(jnp.bfloat16)
    for n in ("1", "2", "3"):
        w = (params["w" + n] * params["s" + n]).astype(jnp.bfloat16)
        b = params["b" + n] * params["s" + n] + params["t" + n]
        x = jnp.dot(x, w, preferred_element_type=jnp.float32) + b
        x = jnp.maximum(x, 0.0).astype(jnp.bfloat16)
    x = jnp.dot(x, params["w4"].astype(jnp.bfloat16),
                preferred_element_type=jnp.float32) + params["b4"]
    return jax.nn.sigmoid(x).astype(jnp.bfloat16).astype(jnp.float32)


if __name__ == "__main__":
    key = jax.random.PRNGKey(0)

    # Small shapes consistent with the module's forward:
    batch = 8
    encoded_size = 12        # args.cvae_encoded_size
    num_labels = 3           # len(encoded_feature_name)
    h3, h2, h1 = 32, 64, 48  # cvae_hidden_size3/2/1
    data_size = 10           # len(data_frame.columns) -> output dim = 9
    d_in = encoded_size + 1 + num_labels
    d_out = data_size - 1

    kz, kc, kl, kp = jax.random.split(key, 4)
    z = jax.random.normal(kz, (batch, encoded_size), jnp.float32)
    c = jax.random.normal(kc, (batch, 1), jnp.float32)
    label = (jax.random.uniform(kl, (batch, num_labels)) > 0.5).astype(jnp.float32)

    params = make_params(kp, d_in, h3, h2, h1, d_out)
    prepped = prepare_params(params)          # one-time: BN fold + pad + bf16 cast

    out = nn_decoder_forward(z, c, label, prepped)
    out = jax.block_until_ready(out)
    assert out.shape == (batch, d_out)

    # Check against a reference doing the same bf16-matmul / bf16-output math.
    ref_bf16 = reference_forward_bf16(z, c, label, params)
    assert jnp.allclose(out, ref_bf16, atol=8e-3, rtol=1e-2), \
        "mismatch vs bf16-matched reference"

    # Loose check against the full-f32 module semantics (bf16 rounding slack).
    ref_f32 = reference_forward_f32(z, c, label, params)
    assert jnp.allclose(out, ref_f32, atol=3e-2, rtol=2e-2), \
        "mismatch vs f32 reference"

    print("KERNEL_OK")
</pallas_src>

<mosaic_0001>
module attributes {stable_mosaic.version = 11 : i64} {
  func.func @_decoder_kernel(%arg0: i32, %arg1: memref<16x16xbf16, #tpu.memory_space<vmem>>, %arg2: memref<16x128xbf16, #tpu.memory_space<vmem>>, %arg3: memref<1x128xf32, #tpu.memory_space<vmem>>, %arg4: memref<128x128xbf16, #tpu.memory_space<vmem>>, %arg5: memref<1x128xf32, #tpu.memory_space<vmem>>, %arg6: memref<128x128xbf16, #tpu.memory_space<vmem>>, %arg7: memref<1x128xf32, #tpu.memory_space<vmem>>, %arg8: memref<128x128xbf16, #tpu.memory_space<vmem>>, %arg9: memref<1x128xf32, #tpu.memory_space<vmem>>, %arg10: memref<16x128xbf16, #tpu.memory_space<vmem>>) attributes {dimension_semantics = [#tpu.dimension_semantics<parallel>], iteration_bounds = array<i64: 1>, scalar_prefetch = 0 : i64, scratch_operands = 0 : i64, tpu.core_type = #tpu.core_type<tc>, window_params = [{transform_indices = @transform_0, window_bounds = array<i64: 16, 16>}, {pipeline_mode = #tpu.pipeline_mode<synchronous>, transform_indices = @transform_1, window_bounds = array<i64: 16, 128>}, {pipeline_mode = #tpu.pipeline_mode<synchronous>, transform_indices = @transform_2, window_bounds = array<i64: 1, 128>}, {pipeline_mode = #tpu.pipeline_mode<synchronous>, transform_indices = @transform_3, window_bounds = array<i64: 128, 128>}, {pipeline_mode = #tpu.pipeline_mode<synchronous>, transform_indices = @transform_4, window_bounds = array<i64: 1, 128>}, {pipeline_mode = #tpu.pipeline_mode<synchronous>, transform_indices = @transform_5, window_bounds = array<i64: 128, 128>}, {pipeline_mode = #tpu.pipeline_mode<synchronous>, transform_indices = @transform_6, window_bounds = array<i64: 1, 128>}, {pipeline_mode = #tpu.pipeline_mode<synchronous>, transform_indices = @transform_7, window_bounds = array<i64: 128, 128>}, {pipeline_mode = #tpu.pipeline_mode<synchronous>, transform_indices = @transform_8, window_bounds = array<i64: 1, 128>}, {transform_indices = @transform_9, window_bounds = array<i64: 16, 128>}]} {
    %c0 = arith.constant 0 : index
    %c0_0 = arith.constant 0 : index
    %0 = vector.load %arg1[%c0, %c0_0] : memref<16x16xbf16, #tpu.memory_space<vmem>>, vector<16x16xbf16>
    %c0_1 = arith.constant 0 : index
    %c0_2 = arith.constant 0 : index
    %1 = vector.load %arg2[%c0_1, %c0_2] : memref<16x128xbf16, #tpu.memory_space<vmem>>, vector<16x128xbf16>
    %cst = arith.constant dense<0.000000e+00> : vector<16x128xf32>
    %2 = tpu.matmul %0, %1, %cst {dimension_numbers = #tpu.dot_dimension_numbers<[1], [0], [0], [1], [0, 0, 1, 1], [], []>} : vector<16x16xbf16>, vector<16x128xbf16>, vector<16x128xf32> -> vector<16x128xf32>
    %c0_3 = arith.constant 0 : index
    %c0_4 = arith.constant 0 : index
    %3 = vector.load %arg3[%c0_3, %c0_4] : memref<1x128xf32, #tpu.memory_space<vmem>>, vector<1x128xf32>
    %4 = vector.broadcast %3 : vector<1x128xf32> to vector<16x128xf32>
    %5 = arith.addf %2, %4 : vector<16x128xf32>
    %cst_5 = arith.constant 0.000000e+00 : f32
    %6 = vector.broadcast %cst_5 : f32 to vector<16x128xf32>
    %7 = arith.maximumf %5, %6 : vector<16x128xf32>
    %8 = arith.truncf %7 : vector<16x128xf32> to vector<16x128xbf16>
    %c0_6 = arith.constant 0 : index
    %c0_7 = arith.constant 0 : index
    %9 = vector.load %arg4[%c0_6, %c0_7] : memref<128x128xbf16, #tpu.memory_space<vmem>>, vector<128x128xbf16>
    %cst_8 = arith.constant dense<0.000000e+00> : vector<16x128xf32>
    %10 = tpu.matmul %8, %9, %cst_8 {dimension_numbers = #tpu.dot_dimension_numbers<[1], [0], [0], [1], [0, 0, 1, 1], [], []>} : vector<16x128xbf16>, vector<128x128xbf16>, vector<16x128xf32> -> vector<16x128xf32>
    %c0_9 = arith.constant 0 : index
    %c0_10 = arith.constant 0 : index
    %11 = vector.load %arg5[%c0_9, %c0_10] : memref<1x128xf32, #tpu.memory_space<vmem>>, vector<1x128xf32>
    %12 = vector.broadcast %11 : vector<1x128xf32> to vector<16x128xf32>
    %13 = arith.addf %10, %12 : vector<16x128xf32>
    %cst_11 = arith.constant 0.000000e+00 : f32
    %14 = vector.broadcast %cst_11 : f32 to vector<16x128xf32>
    %15 = arith.maximumf %13, %14 : vector<16x128xf32>
    %16 = arith.truncf %15 : vector<16x128xf32> to vector<16x128xbf16>
    %c0_12 = arith.constant 0 : index
    %c0_13 = arith.constant 0 : index
    %17 = vector.load %arg6[%c0_12, %c0_13] : memref<128x128xbf16, #tpu.memory_space<vmem>>, vector<128x128xbf16>
    %cst_14 = arith.constant dense<0.000000e+00> : vector<16x128xf32>
    %18 = tpu.matmul %16, %17, %cst_14 {dimension_numbers = #tpu.dot_dimension_numbers<[1], [0], [0], [1], [0, 0, 1, 1], [], []>} : vector<16x128xbf16>, vector<128x128xbf16>, vector<16x128xf32> -> vector<16x128xf32>
    %c0_15 = arith.constant 0 : index
    %c0_16 = arith.constant 0 : index
    %19 = vector.load %arg7[%c0_15, %c0_16] : memref<1x128xf32, #tpu.memory_space<vmem>>, vector<1x128xf32>
    %20 = vector.broadcast %19 : vector<1x128xf32> to vector<16x128xf32>
    %21 = arith.addf %18, %20 : vector<16x128xf32>
    %cst_17 = arith.constant 0.000000e+00 : f32
    %22 = vector.broadcast %cst_17 : f32 to vector<16x128xf32>
    %23 = arith.maximumf %21, %22 : vector<16x128xf32>
    %24 = arith.truncf %23 : vector<16x128xf32> to vector<16x128xbf16>
    %c0_18 = arith.constant 0 : index
    %c0_19 = arith.constant 0 : index
    %25 = vector.load %arg8[%c0_18, %c0_19] : memref<128x128xbf16, #tpu.memory_space<vmem>>, vector<128x128xbf16>
    %cst_20 = arith.constant dense<0.000000e+00> : vector<16x128xf32>
    %26 = tpu.matmul %24, %25, %cst_20 {dimension_numbers = #tpu.dot_dimension_numbers<[1], [0], [0], [1], [0, 0, 1, 1], [], []>} : vector<16x128xbf16>, vector<128x128xbf16>, vector<16x128xf32> -> vector<16x128xf32>
    %c0_21 = arith.constant 0 : index
    %c0_22 = arith.constant 0 : index
    %27 = vector.load %arg9[%c0_21, %c0_22] : memref<1x128xf32, #tpu.memory_space<vmem>>, vector<1x128xf32>
    %28 = vector.broadcast %27 : vector<1x128xf32> to vector<16x128xf32>
    %29 = arith.addf %26, %28 : vector<16x128xf32>
    %30 = arith.negf %29 : vector<16x128xf32>
    %31 = math.exp %30 : vector<16x128xf32>
    %cst_23 = arith.constant 1.000000e+00 : f32
    %32 = vector.broadcast %cst_23 : f32 to vector<16x128xf32>
    %33 = arith.addf %32, %31 : vector<16x128xf32>
    %34 = arith.divf %32, %33 : vector<16x128xf32>
    %35 = arith.truncf %34 : vector<16x128xf32> to vector<16x128xbf16>
    %c0_24 = arith.constant 0 : index
    %c0_25 = arith.constant 0 : index
    %36 = vector.load %arg10[%c0_24, %c0_25] : memref<16x128xbf16, #tpu.memory_space<vmem>>, vector<16x128xbf16>
    tpu.vector_store %arg10[%c0_24, %c0_25], %35 {strides = array<i32>} : memref<16x128xbf16, #tpu.memory_space<vmem>>, vector<16x128xbf16>,
    return
  }
  func.func @transform_0(%arg0: i32) -> (i32, i32) {
    %c0_i32 = arith.constant 0 : i32
    %c0_i32_0 = arith.constant 0 : i32
    return %arg0, %c0_i32 : i32, i32
  }
  func.func @transform_1(%arg0: i32) -> (i32, i32) {
    %c0_i32 = arith.constant 0 : i32
    %c0_i32_0 = arith.constant 0 : i32
    %c0_i32_1 = arith.constant 0 : i32
    return %c0_i32, %c0_i32_0 : i32, i32
  }
  func.func @transform_2(%arg0: i32) -> (i32, i32) {
    %c0_i32 = arith.constant 0 : i32
    %c0_i32_0 = arith.constant 0 : i32
    %c0_i32_1 = arith.constant 0 : i32
    return %c0_i32, %c0_i32_0 : i32, i32
  }
  func.func @transform_3(%arg0: i32) -> (i32, i32) {
    %c0_i32 = arith.constant 0 : i32
    %c0_i32_0 = arith.constant 0 : i32
    %c0_i32_1 = arith.constant 0 : i32
    return %c0_i32, %c0_i32_0 : i32, i32
  }
  func.func @transform_4(%arg0: i32) -> (i32, i32) {
    %c0_i32 = arith.constant 0 : i32
    %c0_i32_0 = arith.constant 0 : i32
    %c0_i32_1 = arith.constant 0 : i32
    return %c0_i32, %c0_i32_0 : i32, i32
  }
  func.func @transform_5(%arg0: i32) -> (i32, i32) {
    %c0_i32 = arith.constant 0 : i32
    %c0_i32_0 = arith.constant 0 : i32
    %c0_i32_1 = arith.constant 0 : i32
    return %c0_i32, %c0_i32_0 : i32, i32
  }
  func.func @transform_6(%arg0: i32) -> (i32, i32) {
    %c0_i32 = arith.constant 0 : i32
    %c0_i32_0 = arith.constant 0 : i32
    %c0_i32_1 = arith.constant 0 : i32
    return %c0_i32, %c0_i32_0 : i32, i32
  }
  func.func @transform_7(%arg0: i32) -> (i32, i32) {
    %c0_i32 = arith.constant 0 : i32
    %c0_i32_0 = arith.constant 0 : i32
    %c0_i32_1 = arith.constant 0 : i32
    return %c0_i32, %c0_i32_0 : i32, i32
  }
  func.func @transform_8(%arg0: i32) -> (i32, i32) {
    %c0_i32 = arith.constant 0 : i32
    %c0_i32_0 = arith.constant 0 : i32
    %c0_i32_1 = arith.constant 0 : i32
    return %c0_i32, %c0_i32_0 : i32, i32
  }
  func.func @transform_9(%arg0: i32) -> (i32, i32) {
    %c0_i32 = arith.constant 0 : i32
    %c0_i32_0 = arith.constant 0 : i32
    return %arg0, %c0_i32 : i32, i32
  }
}

</mosaic_0001>

<bundles_post_ra>
// kernel: tpu_custom_call.1
= control target key start
LH: loop header
LB: loop body
LE: loop exit
PB: predicated region body
PF: predicated region fallthrough
CT: control target
= control target key end

     0   :  { %14 = vsyncpa [#allocation3], 0  ;;  %s1085_s0 = inlined_call_operand.hbm [shape: bf16[16,16], index: 0, kind: input, shape index: {}]   ;;  %s1086_s1 = inlined_call_operand.hbm [shape: bf16[16,128], index: 1, kind: input, shape index: {}]   ;;  %s1087_s2 = inlined_call_operand.vmem [shape: f32[1,128], index: 2, kind: input, shape index: {}]   ;;  %s1088_s3 = inlined_call_operand.hbm [shape: bf16[128,128], index: 3, kind: input, shape index: {}]   ;;  %s1089_s4 = inlined_call_operand.vmem [shape: f32[1,128], index: 4, kind: input, shape index: {}]   ;;  %s1090_s5 = inlined_call_operand.hbm [shape: bf16[128,128], index: 5, kind: input, shape index: {}]   ;;  %s1091_s6 = inlined_call_operand.vmem [shape: f32[1,128], index: 6, kind: input, shape index: {}]   ;;  %s1092_s7 = inlined_call_operand.hbm [shape: bf16[128,128], index: 7, kind: input, shape index: {}]   ;;  %s1093_s8 = inlined_call_operand.vmem [shape: f32[1,128], index: 8, kind: input, shape index: {}]   ;;  %s1094_s9 = inlined_call_operand.hbm [shape: bf16[16,128], index: 9, kind: output, shape index: {}]  }
   0x1   :  { %15 = vsyncpa [#allocation6], 0 }
   0x2   :  { %16 = vsyncpa [#allocation9], 0 }
   0x3   :  { %17 = vsyncpa [#allocation4], 0  ;;  %s876_s30 = smov [#allocation5]   ;;  %s877_s11 = smov [#allocation8]  }
   0x4   :  { %s35_s10 = sshll.u32 %s876_s30, 4  ;;  %s63_s12 = sshll.u32 %s877_s11, 4  ;;  %s36_s10 = int_to_ptr.vmem [resolvable:$true] %s35_s10  ;;  %s936_s12 = int_to_ptr.vmem [resolvable:$true] %s63_s12 }
   0x5   :  { %s736_s15 = scalar_lea.hbm %s1086_s1, 128 }
   0x6   :  { %p737_p0 = scmp.ne.s32.totalorder %s1086_s1, %s736_s15  ;;  %p740_p1 = scmp.lt.u32.totalorder %s736_s15, %s1086_s1 }
   0x8   :  { %p742_p2 = pnand %p740_p1, %p737_p0 }
   0xa   :  { %745 = shalt.err (!%p742_p2)
}
   0xb   :  { %s746_s20 = scalar_lea.vmem %s36_s10, 128  ;;  %p751_p4 = scmp.lt.s32.totalorder %s36_s10, %s36_s10 }
   0xc   :  { %p747_p3 = scmp.ne.s32.totalorder %s36_s10, %s746_s20  ;;  %p752_p5 = scmp.lt.s32.totalorder %s746_s20, %s746_s20 }
   0xe   :  { %p753_p6 = por %p752_p5, %p751_p4 }
  0x10   :  { %p754_p7 = pnand %p753_p6, %p747_p3 }
  0x12   :  { %757 = shalt.err (!%p754_p7)
}
  0x13   :  { %s878_s21 = smov 64   ;;  %s879_s22 = smov 4  }
  0x14   :  { %41 = dma.hbm_to_vmem [thread:$0]  %s1086_s1, 128, %s36_s10, [#allocation6], %s878_s21, %s878_s21, %s879_s22  }
  0x15   :  { %s758_s27 = scalar_lea.hbm %s1090_s5, 1024 }
  0x16   :  { %p759_p8 = scmp.ne.s32.totalorder %s1090_s5, %s758_s27  ;;  %p762_p9 = scmp.lt.u32.totalorder %s758_s27, %s1090_s5 }
  0x18   :  { %p764_p10 = pnand %p762_p9, %p759_p8 }
  0x1a   :  { %767 = shalt.err (!%p764_p10)
}
  0x1b   :  { %s768_s13 = scalar_lea.vmem %s936_s12, 1024  ;;  %p773_p12 = scmp.lt.s32.totalorder %s936_s12, %s936_s12 }
  0x1c   :  { %p769_p11 = scmp.ne.s32.totalorder %s936_s12, %s768_s13  ;;  %p774_p13 = scmp.lt.s32.totalorder %s768_s13, %s768_s13 }
  0x1e   :  { %p775_p0 = por %p774_p13, %p773_p12 }
  0x20   :  { %p776_p1 = pnand %p775_p0, %p769_p11 }
  0x22   :  { %779 = shalt.err (!%p776_p1)
}
  0x23   :  { %69 = dma.hbm_to_vmem [thread:$0]  %s1090_s5, 1024, %s936_s12, [#allocation9], %s878_s21, %s878_s21, %s879_s22  }
  0x24   :  { %s880_s14 = smov [#allocation2]   ;;  %s881_s16 = smov [#allocation7]  }
  0x25   :  { %s23_s15 = sshll.u32 %s880_s14, 4  ;;  %s49_s17 = sshll.u32 %s881_s16, 4  ;;  %s24_s15 = int_to_ptr.vmem [resolvable:$true] %s23_s15  ;;  %s973_s17 = int_to_ptr.vmem [resolvable:$true] %s49_s17 }
  0x26   :  { %s780_s20 = scalar_lea.hbm %s1085_s0, 128 }
  0x27   :  { %p781_p2 = scmp.ne.s32.totalorder %s1085_s0, %s780_s20  ;;  %p784_p3 = scmp.lt.u32.totalorder %s780_s20, %s1085_s0 }
  0x29   :  { %p786_p4 = pnand %p784_p3, %p781_p2 }
  0x2b   :  { %789 = shalt.err (!%p786_p4)
}
  0x2c   :  { %s790_s5 = scalar_lea.vmem %s24_s15, 128  ;;  %p795_p6 = scmp.lt.s32.totalorder %s24_s15, %s24_s15 }
  0x2d   :  { %p791_p5 = scmp.ne.s32.totalorder %s24_s15, %s790_s5  ;;  %p796_p7 = scmp.lt.s32.totalorder %s790_s5, %s790_s5 }
  0x2f   :  { %p797_p8 = por %p796_p7, %p795_p6 }
  0x31   :  { %p798_p9 = pnand %p797_p8, %p791_p5 }
  0x33   :  { %801 = shalt.err (!%p798_p9)
}
  0x34   :  { %29 = dma.hbm_to_vmem [thread:$0]  %s1085_s0, 128, %s24_s15, [#allocation3], %s878_s21, %s878_s21, %s879_s22  }
  0x35   :  { %s802_s30 = scalar_lea.hbm %s1088_s3, 1024 }
  0x36   :  { %p803_p10 = scmp.ne.s32.totalorder %s1088_s3, %s802_s30  ;;  %p806_p11 = scmp.lt.u32.totalorder %s802_s30, %s1088_s3 }
  0x38   :  { %p808_p12 = pnand %p806_p11, %p803_p10 }
  0x3a   :  { %811 = shalt.err (!%p808_p12)
}
  0x3b   :  { %s812_s14 = scalar_lea.vmem %s973_s17, 1024  ;;  %p817_p0 = scmp.lt.s32.totalorder %s973_s17, %s973_s17 }
  0x3c   :  { %p813_p13 = scmp.ne.s32.totalorder %s973_s17, %s812_s14  ;;  %p818_p1 = scmp.lt.s32.totalorder %s812_s14, %s812_s14 }
  0x3e   :  { %p819_p2 = por %p818_p1, %p817_p0 }
  0x40   :  { %p820_p3 = pnand %p819_p2, %p813_p13 }
  0x42   :  { %823 = shalt.err (!%p820_p3)
}
  0x43   :  { %55 = dma.hbm_to_vmem [thread:$0]  %s1088_s3, 1024, %s973_s17, [#allocation6], %s878_s21, %s878_s21, %s879_s22  }
  0x44   :  { %s882_s16 = smov [#allocation10]   ;;  %s824_s23 = scalar_lea.hbm %s1092_s7, 1024 }
  0x45   :  { %s77_s18 = sshll.u32 %s882_s16, 4  ;;  %p825_p4 = scmp.ne.s32.totalorder %s1092_s7, %s824_s23  ;;  %s78_s18 = int_to_ptr.vmem [resolvable:$true] %s77_s18 }
  0x46   :  { %p828_p5 = scmp.lt.u32.totalorder %s824_s23, %s1092_s7 }
  0x48   :  { %p830_p6 = pnand %p828_p5, %p825_p4 }
  0x4a   :  { %833 = shalt.err (!%p830_p6)
}
  0x4b   :  { %s834_s12 = scalar_lea.vmem %s78_s18, 1024  ;;  %p839_p8 = scmp.lt.s32.totalorder %s78_s18, %s78_s18 }
  0x4c   :  { %p835_p7 = scmp.ne.s32.totalorder %s78_s18, %s834_s12  ;;  %p840_p9 = scmp.lt.s32.totalorder %s834_s12, %s834_s12 }
  0x4e   :  { %p841_p10 = por %p840_p9, %p839_p8 }
  0x50   :  { %p842_p11 = pnand %p841_p10, %p835_p7 }
  0x52   :  { %845 = shalt.err (!%p842_p11)
}
  0x53   :  { %83 = dma.hbm_to_vmem [thread:$0]  %s1092_s7, 1024, %s78_s18, [#allocation9], %s878_s21, %s878_s21, %s879_s22  }
  0x54   :  { %868 = dma.done.wait [#allocation3], 128  }
  0x55   :  { %869 = vsyncadd [#allocation3], 4294967168 }
  0x56   :  { %870 = dma.done.wait [#allocation6], 1152  }
  0x57   :  { %871 = vsyncadd [#allocation6], 4294966144 }
  0x58   :  { %872 = dma.done.wait [#allocation9], 2048  }
  0x59   :  { %873 = vsyncadd [#allocation9], 4294965248  ;;  %v883_v0 = vmov 0.0   ;;  %vm884_vm0 = vmmov 0   ;;  %v702_v1 = vld [vmem:[#allocation5] sm:$0xff]   ;;  %v703_v2 = vld [vmem:[#allocation2] sm:$0xff]  }
  0x5a   :  { %626 = vmatprep.subr.bf16.mxu0 %v883_v0  ;;  %628 = vmatprep.mubr.msk.bf16.mxu0 %vm884_vm0, %v883_v0  ;;  %vm124_vm1 = vcmask 130048   ;;  %v704_v3 = vld [vmem:[#allocation7] sm:$0xff]   ;;  %v705_v4 = vld [vmem:[#allocation7 + $0x8] sm:$0xff]   ;;  %v706_v5 = vld [vmem:[#allocation7 + $0x10] sm:$0xff]  }
  0x5b   :  { %632 = vmatprep.subr.bf16.mxu1 %v883_v0  ;;  %648 = vmatprep.mubr.msk.bf16.mxu1 %vm884_vm0, %v883_v0  ;;  %v707_v6 = vld [vmem:[#allocation7 + $0x18] sm:$0xff]   ;;  %v708_v7 = vld [vmem:[#allocation7 + $0x20] sm:$0xff]   ;;  %v709_v8 = vld [vmem:[#allocation7 + $0x28] sm:$0xff]  }
  0x5c   :  { %627 = vmatpush3.bf16.msra.mxu0 %v702_v1  ;;  %633 = vmatpush3.bf16.msra.mxu1 %v704_v3  ;;  %v710_v9 = vld [vmem:[#allocation7 + $0x30] sm:$0xff]   ;;  %v711_v10 = vld [vmem:[#allocation7 + $0x38] sm:$0xff]   ;;  %v712_v11 = vld [vmem:[#allocation8] sm:$0xff]  }
  0x5d   :  { %652 = vmatprep.subr.bf16.mxu0 %v883_v0  ;;  %634 = vmatprep.subr.bf16.mxu1 %v883_v0  ;;  %v713_v12 = vld [vmem:[#allocation8 + $0x8] sm:$0xff]   ;;  %v714_v13 = vld [vmem:[#allocation8 + $0x10] sm:$0xff]   ;;  %v715_v14 = vld [vmem:[#allocation8 + $0x18] sm:$0xff]  }
  0x5e   :  { %v716_v15 = vld [vmem:[#allocation8 + $0x20] sm:$0xff]   ;;  %v717_v16 = vld [vmem:[#allocation8 + $0x28] sm:$0xff]   ;;  %v555_v17 = vld [vmem:[%s1087_s2] ss:$0 sm:$0xff] }
  0x5f   :  { %629 = vmatmul.mubr.msk.bf16.vlgmr.msra.gmra.mrb[0].mxu0 %vm124_vm1, %v703_v2  ;;  %v718_v27 = vld [vmem:[#allocation8 + $0x30] sm:$0xff]   ;;  %v719_v28 = vld [vmem:[#allocation8 + $0x38] sm:$0xff]   ;;  %v720_v29 = vld [vmem:[#allocation10] sm:$0xff]  }
  0x60   :  { %668 = vmatprep.mubr.msk.bf16.mxu0 %vm884_vm0, %v883_v0  ;;  %635 = vmatpush3.bf16.msra.mxu1 %v705_v4  ;;  %v721_v30 = vld [vmem:[#allocation10 + $0x8] sm:$0xff]   ;;  %v722_v31 = vld [vmem:[#allocation10 + $0x10] sm:$0xff]   ;;  %v723_v32 = vld [vmem:[#allocation10 + $0x18] sm:$0xff]  }
  0x61   :  { %636 = vmatprep.subr.bf16.mxu1 %v883_v0  ;;  %653 = vmatpush3.bf16.msra.mxu0 %v712_v11  ;;  %v724_v33 = vld [vmem:[#allocation10 + $0x20] sm:$0xff]   ;;  %v725_v34 = vld [vmem:[#allocation10 + $0x28] sm:$0xff]   ;;  %v559_v35 = vld [vmem:[%s1089_s4] ss:$0 sm:$0xff] }
  0x62   :  { %654 = vmatprep.subr.bf16.mxu0 %v883_v0  ;;  %v726_v45 = vld [vmem:[#allocation10 + $0x30] sm:$0xff]   ;;  %v727_v46 = vld [vmem:[#allocation10 + $0x38] sm:$0xff]  }
  0x63   :  { %v568_v47 = vld [vmem:[%s1091_s6] ss:$0 sm:$0xff]  ;;  %s885_s6 = smov [#allocation11]  }
  0x64   :  { %637 = vmatpush3.bf16.msra.mxu1 %v706_v5  ;;  %v577_v57 = vld [vmem:[%s1093_s8] ss:$0 sm:$0xff]  ;;  %s541_s13 = sshll.u32 %s885_s6, 4  ;;  %s542_s13 = int_to_ptr.vmem [resolvable:$true] %s541_s13 }
  0x65   :  { %638 = vmatprep.subr.bf16.mxu1 %v883_v0  ;;  %655 = vmatpush3.bf16.msra.mxu0 %v713_v12  ;;  %s846_s8 = scalar_lea.vmem %s542_s13, 128  ;;  %p851_p13 = scmp.lt.s32.totalorder %s542_s13, %s542_s13 }
  0x66   :  { %656 = vmatprep.subr.bf16.mxu0 %v883_v0  ;;  %p847_p12 = scmp.ne.s32.totalorder %s542_s13, %s846_s8  ;;  %p852_p0 = scmp.lt.s32.totalorder %s846_s8, %s846_s8 }
  0x68   :  { %639 = vmatpush3.bf16.msra.mxu1 %v707_v6  ;;  %p853_p1 = por %p852_p0, %p851_p13 }
  0x69   :  { %640 = vmatprep.subr.bf16.mxu1 %v883_v0  ;;  %657 = vmatpush3.bf16.msra.mxu0 %v714_v13 }
  0x6a   :  { %658 = vmatprep.subr.bf16.mxu0 %v883_v0  ;;  %p854_p2 = pnand %p853_p1, %p847_p12 }
  0x6c   :  { %641 = vmatpush3.bf16.msra.mxu1 %v708_v7 }
  0x6d   :  { %642 = vmatprep.subr.bf16.mxu1 %v883_v0  ;;  %659 = vmatpush3.bf16.msra.mxu0 %v715_v14 }
  0x6e   :  { %660 = vmatprep.subr.bf16.mxu0 %v883_v0 }
  0x70   :  { %643 = vmatpush3.bf16.msra.mxu1 %v709_v8 }
  0x71   :  { %644 = vmatprep.subr.bf16.mxu1 %v883_v0  ;;  %661 = vmatpush3.bf16.msra.mxu0 %v716_v15 }
  0x72   :  { %662 = vmatprep.subr.bf16.mxu0 %v883_v0 }
  0x74   :  { %645 = vmatpush3.bf16.msra.mxu1 %v710_v9 }
  0x75   :  { %646 = vmatprep.subr.bf16.mxu1 %v883_v0  ;;  %663 = vmatpush3.bf16.msra.mxu0 %v717_v16 }
  0x76   :  { %664 = vmatprep.subr.bf16.mxu0 %v883_v0 }
  0x78   :  { %647 = vmatpush3.bf16.msra.mxu1 %v711_v10 }
  0x79   :  { %672 = vmatprep.subr.bf16.mxu1 %v883_v0  ;;  %665 = vmatpush3.bf16.msra.mxu0 %v718_v27 }
  0x7a   :  { %666 = vmatprep.subr.bf16.mxu0 %v883_v0 }
  0x7d   :  { %667 = vmatpush3.bf16.msra.mxu0 %v719_v28 }
 0x132   :  { %v162_v18 = vpop.f32.mrb[0].mxu0 }
 0x133   :  { %v163_v19 = vadd.f32 %v555_v17, %v162_v18  ;;  %v630_v20 = vpop.f32.mrb[1].mxu0 }
 0x134   :  { %v165_v21 = vpop.f32.mrb[2].mxu0 }
 0x135   :  { %v166_v22 = vadd.f32 %v555_v17, %v165_v21  ;;  %v631_v23 = vpop.f32.mrb[3].mxu0  ;;  %v169_v24 = vmax.f32 %v163_v19, 0.0 }
 0x137   :  { %v170_v25 = vmax.f32 %v166_v22, 0.0 }
 0x139   :  { %v171_v26 = vpack.c.bf16 %v170_v25, %v169_v24 }
 0x13b   :  { %649 = vmatmul.mubr.bf16.vlgmr.msra.gmra.mrb[0].mxu1 %v171_v26 }
 0x13c   :  { %688 = vmatprep.mubr.msk.bf16.mxu1 %vm884_vm0, %v883_v0  ;;  %673 = vmatpush3.bf16.msra.mxu1 %v720_v29 }
 0x13d   :  { %674 = vmatprep.subr.bf16.mxu1 %v883_v0 }
 0x140   :  { %675 = vmatpush3.bf16.msra.mxu1 %v721_v30 }
 0x141   :  { %676 = vmatprep.subr.bf16.mxu1 %v883_v0 }
 0x144   :  { %677 = vmatpush3.bf16.msra.mxu1 %v722_v31 }
 0x145   :  { %678 = vmatprep.subr.bf16.mxu1 %v883_v0 }
 0x148   :  { %679 = vmatpush3.bf16.msra.mxu1 %v723_v32 }
 0x149   :  { %680 = vmatprep.subr.bf16.mxu1 %v883_v0 }
 0x14c   :  { %681 = vmatpush3.bf16.msra.mxu1 %v724_v33 }
 0x14d   :  { %682 = vmatprep.subr.bf16.mxu1 %v883_v0 }
 0x150   :  { %683 = vmatpush3.bf16.msra.mxu1 %v725_v34 }
 0x151   :  { %684 = vmatprep.subr.bf16.mxu1 %v883_v0 }
 0x154   :  { %685 = vmatpush3.bf16.msra.mxu1 %v726_v45 }
 0x155   :  { %686 = vmatprep.subr.bf16.mxu1 %v883_v0 }
 0x158   :  { %687 = vmatpush3.bf16.msra.mxu1 %v727_v46 }
 0x20e   :  { %v277_v36 = vpop.f32.mrb[0].mxu1 }
 0x20f   :  { %v278_v37 = vadd.f32 %v559_v35, %v277_v36  ;;  %v650_v38 = vpop.f32.mrb[1].mxu1 }
 0x210   :  { %v280_v39 = vpop.f32.mrb[2].mxu1 }
 0x211   :  { %v281_v40 = vadd.f32 %v559_v35, %v280_v39  ;;  %v651_v41 = vpop.f32.mrb[3].mxu1  ;;  %v284_v42 = vmax.f32 %v278_v37, 0.0 }
 0x213   :  { %v285_v43 = vmax.f32 %v281_v40, 0.0 }
 0x215   :  { %v286_v44 = vpack.c.bf16 %v285_v43, %v284_v42 }
 0x217   :  { %669 = vmatmul.mubr.bf16.vlgmr.msra.gmra.mrb[4].mxu0 %v286_v44 }
 0x2ea   :  { %v392_v48 = vpop.f32.mrb[4].mxu0 }
 0x2eb   :  { %v393_v49 = vadd.f32 %v568_v47, %v392_v48  ;;  %v670_v50 = vpop.f32.mrb[5].mxu0 }
 0x2ec   :  { %v395_v51 = vpop.f32.mrb[6].mxu0 }
 0x2ed   :  { %v396_v52 = vadd.f32 %v568_v47, %v395_v51  ;;  %v671_v53 = vpop.f32.mrb[7].mxu0  ;;  %v399_v54 = vmax.f32 %v393_v49, 0.0 }
 0x2ef   :  { %v400_v55 = vmax.f32 %v396_v52, 0.0 }
 0x2f1   :  { %v401_v56 = vpack.c.bf16 %v400_v55, %v399_v54 }
 0x2f3   :  { %689 = vmatmul.mubr.bf16.vlgmr.msra.gmra.mrb[4].mxu1 %v401_v56 }
 0x3c6   :  { %v507_v58 = vpop.f32.mrb[4].mxu1 }
 0x3c7   :  { %v508_v59 = vadd.f32 %v577_v57, %v507_v58  ;;  %v690_v60 = vpop.f32.mrb[5].mxu1 }
 0x3c8   :  { %v510_v61 = vpop.f32.mrb[6].mxu1 }
 0x3c9   :  { %v586_v62 = vmul.f32 -1.442695, %v508_v59  ;;  %v511_v63 = vadd.f32 %v577_v57, %v510_v61  ;;  %v691_v0 = vpop.f32.mrb[7].mxu1 }
 0x3cb   :  { %728 = vpow2.f32 %v586_v62  ;;  %v587_v1 = vmul.f32 -1.442695, %v511_v63 }
 0x3cd   :  { %730 = vpow2.f32 %v587_v1 }
 0x3d5   :  { %v729_v2 = vpop.eup %728 }
 0x3d6   :  { %v520_v3 = vadd.f32 1.0, %v729_v2 }
 0x3d7   :  { %v731_v4 = vpop.eup %730 }
 0x3d8   :  { %v521_v5 = vadd.f32 1.0, %v731_v4  ;;  %732 = vrcp.f32 %v520_v3 }
 0x3da   :  { %734 = vrcp.f32 %v521_v5 }
 0x3e2   :  { %v733_v6 = vpop.eup %732 }
 0x3e4   :  { %v735_v7 = vpop.eup %734 }
 0x3e5   :  { %v595_v8 = vpack.c.bf16 %v735_v7, %v733_v6 }
 0x3e7   :  { %596 = vst [vmem:[#allocation11] sm:$0xff] %v595_v8  }
 0x3e8   :  { %857 = shalt.err (!%p854_p2)
}
 0x3e9   :  { %s858_s14 = scalar_lea.hbm %s1094_s9, 128 }
 0x3ea   :  { %p859_p3 = scmp.ne.s32.totalorder %s1094_s9, %s858_s14  ;;  %p862_p4 = scmp.lt.u32.totalorder %s858_s14, %s1094_s9 }
 0x3ec   :  { %p864_p5 = pnand %p862_p4, %p859_p3 }
 0x3ee   :  { %867 = shalt.err (!%p864_p5)
}
 0x3ef   :  { %547 = dma.vmem_to_hbm [thread:$0]  %s542_s13, 128, %s1094_s9, [#allocation4], %s878_s21, %s878_s21, %s879_s22  }
 0x3f0   :  { %874 = dma.done.wait [#allocation4], 128  }
 0x3f1   :  { %875 = vsyncadd [#allocation4], 4294967168 }
 0x3f2   :  { %551 = vsyncpa [#allocation3], 1 }
 0x3f3   :  { %552 = vsyncpa [#allocation6], 1 }
 0x3f4   :  { %553 = vsyncpa [#allocation9], 1 }
 0x3f5   :  { %554 = vsyncpa [#allocation4], 1 }

</bundles_post_ra>
